<compile_context>
chip_gen: v6e
topology: v6e:2x2x1
jax: 0.10.0
libtpu: 0.0.40
codegen_flags: <defaults>
</compile_context>

<pallas_src>
import functools

import jax
import jax.numpy as jnp
from jax import lax
from jax.experimental import pallas as pl
from jax.experimental.pallas import tpu as pltpu


# --------------------------------------------------------------------------- #
# helpers
# --------------------------------------------------------------------------- #
def _round_up(x: int, m: int) -> int:
    return (x + m - 1) // m * m


def _vmem_capacity_bytes() -> int:
    """Physical VMEM per TensorCore; conservative fallback = v7x (64 MiB)."""
    try:
        cap = getattr(pltpu.get_tpu_info(), "vmem_capacity_bytes", None)
        if cap:
            return int(cap)
    except Exception:
        pass
    return 64 << 20


def _pick_tile(target: int, n: int, other: int) -> int:
    """Largest 128*2^k tile <= target whose padding waste stays below ~12.5%."""
    base = _round_up(n, 128)
    budget = int(1.125 * base)
    chosen = 128
    for c in (128, 256, 512, 1024, 2048):
        if c > max(128, target):
            break
        if _round_up(n, max(c, other)) <= budget:
            chosen = c
    return chosen


def _pick_strip(tj: int, target: int) -> int:
    """Lane width of the in-kernel bf16->f32 cast strips (must divide tj)."""
    best = 128
    for c in (128, 256, 512):
        if c <= max(128, target) and tj % c == 0:
            best = c
    return min(best, tj)


def _fused_vmem_bytes(n_pad: int, c_pad: int, tk: int, tj: int, sj: int) -> int:
    """VMEM footprint of the fused kernel (no full-array f32 copy of A anymore)."""
    a_blocks = 2 * tk * tj * 2                 # streamed bf16 A_T blocks (x2 bufs)
    a_cast = 2 * tk * sj * 4                   # live f32 cast strips (x2 headroom)
    out_blk = 2 * c_pad * tj * 4               # output/acc block (x2 bufs)
    rows = 2 * (c_pad + 3) * n_pad * 4         # labels + mask/anormi/normj rows
    ybuf = 2 * c_pad * n_pad * 4               # ping-pong carried node state
    return a_blocks + a_cast + out_blk + rows + ybuf + (6 << 20)


# --------------------------------------------------------------------------- #
# fused kernel: all k propagation steps in one pallas_call
# --------------------------------------------------------------------------- #
def _lp_fused_kernel(lab_ref, mask_ref, anormi_ref, normj_ref, at_ref,
                     o_ref, ybuf,
                     *, alpha, sj, norm_type, clamp, normalize, reset):
    """grid = (step t, column tile j, reduction tile kk), reduction axis last.

    lab_ref   : (C, N) f32  original (unmasked) labels, class-major, VMEM-resident
    mask_ref  : (1, N) f32  labeled-node mask in {0, 1}
    anormi_ref: (1, N) f32  alpha * norm_i
    normj_ref : (1, N) f32  norm_j ('sym') / ones ('row')
    at_ref    : (tk, tj) bf16 streamed block of A_T (A_T[j, i] = 1 <=> edge j -> i)
    o_ref     : (C, tj) f32  output block; doubles as the reduction accumulator
    ybuf      : (2C, N) f32  VMEM scratch, ping-pong carried node state y^(t)
    """
    t = pl.program_id(0)
    j = pl.program_id(1)
    kk = pl.program_id(2)
    n_red = pl.num_programs(2)
    c_pad = lab_ref.shape[0]
    tk, tj = at_ref.shape

    # One-time init of the carried state: y^(0) = labels * mask.
    @pl.when((t == 0) & (j == 0) & (kk == 0))
    def _init_state():
        ybuf[0:c_pad, :] = lab_ref[...] * mask_ref[...]

    # Zero the (C, tj) accumulator at the start of every reduction sweep.
    @pl.when(kk == 0)
    def _zero_acc():
        o_ref[...] = jnp.zeros_like(o_ref)

    # lhs block: h = y^(t)[:, kk*tk : kk*tk+tk]   (optionally * norm_j for 'sym')
    cur = t % 2
    koff = pl.multiple_of(kk * tk, 128)
    h = ybuf[pl.ds(cur * c_pad, c_pad), pl.ds(koff, tk)]
    if norm_type == "sym":
        h = h * normj_ref[:, pl.ds(koff, tk)]

    # MXU: o += h @ A_T block.  A is cast bf16 -> f32 in bounded lane strips
    # (exact: entries are 0/1), so no tile-sized f32 copy ever lives in VMEM.
    n_strips = tj // sj
    if n_strips == 1:
        o_ref[...] += jnp.dot(h, at_ref[...].astype(jnp.float32),
                              preferred_element_type=jnp.float32)
    else:
        def strip_body(s, carry):
            off = pl.multiple_of(s * sj, 128)
            a_s = at_ref[:, pl.ds(off, sj)].astype(jnp.float32)
            o_ref[:, pl.ds(off, sj)] += jnp.dot(
                h, a_s, preferred_element_type=jnp.float32)
            return carry
        lax.fori_loop(0, n_strips, strip_body, 0)

    # Epilogue at the end of the reduction sweep: finish the step for columns j,
    # write the result to the output block and to the "next" ping-pong slot.
    @pl.when(kk == n_red - 1)
    def _epilogue():
        col = pl.multiple_of(j * tj, 128)
        lab_s = lab_ref[:, pl.ds(col, tj)]
        mask_s = mask_ref[:, pl.ds(col, tj)]
        y0_s = lab_s * mask_s
        y = (1.0 - alpha) * y0_s + o_ref[...] * anormi_ref[:, pl.ds(col, tj)]
        if clamp:
            y = jnp.clip(y, 0.0, 1.0)
        if normalize:
            y = y / jnp.maximum(jnp.sum(jnp.abs(y), axis=0, keepdims=True), 1e-12)
        if reset:
            y = y0_s + (1.0 - mask_s) * y
        o_ref[...] = y
        ybuf[pl.ds((1 - cur) * c_pad, c_pad), pl.ds(col, tj)] = y


# --------------------------------------------------------------------------- #
# wrapper
# --------------------------------------------------------------------------- #
def label_propagation(adj, labels, mask=None, *, k=3, alpha=0.5, norm_type="sym",
                      clamp=True, normalize=False, reset=False, num_classes=None,
                      tile_red=512, tile_cols=2048, cast_strip=512,
                      force_streamed=False):
    """JAX/Pallas equivalent of LabelPropagation.forward(g, labels, mask).

    adj    : (N, N) dense adjacency, adj[i, j] != 0 <=> edge j -> i
    labels : (N,) / (N, 1) int class ids, or (N, C) one-hot / multilabel floats
    mask   : optional (N,) bool, True = labeled node
    Returns the propagated labels, float32 of shape (N, C).
    """
    if norm_type not in ("sym", "row"):
        raise ValueError(f"Expect norm_type to be 'sym' or 'row', got {norm_type}")

    N = adj.shape[0]

    # --- label preparation (mirrors the torch branch on label shape) ---
    if labels.ndim > 1 and labels.shape[1] > 1:
        y_lab = labels.astype(jnp.float32)                        # (N, C)
    else:
        if num_classes is None:
            if isinstance(labels, jax.core.Tracer):
                raise ValueError("num_classes must be provided when labels are "
                                 "traced (jit); max() needs concrete values.")
            num_classes = int(jnp.max(labels)) + 1                # like F.one_hot
        y_lab = jax.nn.one_hot(jnp.reshape(labels, (-1,)), num_classes,
                               dtype=jnp.float32)
    C = y_lab.shape[1]

    mask_f = (jnp.ones((N,), jnp.float32) if mask is None
              else mask.reshape(-1).astype(jnp.float32))

    if int(k) <= 0:
        return y_lab * mask_f[:, None]

    # --- static tiling / path selection -------------------------------------
    c_pad = max(8, _round_up(C, 8))
    vmem_cap = _vmem_capacity_bytes()
    n_pad128 = _round_up(N, 128)
    sj_res = _pick_strip(n_pad128, int(cast_strip))
    resident_bytes = _fused_vmem_bytes(n_pad128, c_pad, n_pad128, n_pad128, sj_res)
    use_resident = (not force_streamed) and resident_bytes <= int(0.8 * vmem_cap)

    if use_resident:
        # whole A_T kept in VMEM: one HBM read of A for all k steps.
        n_pad, tk, tj, sj = n_pad128, n_pad128, n_pad128, sj_res
    else:
        tk = _pick_tile(int(tile_red), N, 128)
        tj = _pick_tile(int(tile_cols), N, tk)
        n_pad = _round_up(N, max(tk, tj))
        sj = _pick_strip(tj, int(cast_strip))

    n_col = n_pad // tj
    n_red = n_pad // tk
    est = _fused_vmem_bytes(n_pad, c_pad, tk, tj, sj)
    vmem_limit = int(min(max(est, 32 << 20), int(0.92 * vmem_cap)))

    kernel = functools.partial(
        _lp_fused_kernel, alpha=float(alpha), sj=int(sj), norm_type=norm_type,
        clamp=bool(clamp), normalize=bool(normalize), reset=bool(reset))

    lp_call = pl.pallas_call(
        kernel,
        out_shape=jax.ShapeDtypeStruct((c_pad, n_pad), jnp.float32),
        grid_spec=pltpu.PrefetchScalarGridSpec(
            num_scalar_prefetch=0,
            grid=(int(k), n_col, n_red),                 # step, columns, reduction
            in_specs=[
                pl.BlockSpec((c_pad, n_pad), lambda t, j, kk: (0, 0)),  # labels
                pl.BlockSpec((1, n_pad), lambda t, j, kk: (0, 0)),      # mask
                pl.BlockSpec((1, n_pad), lambda t, j, kk: (0, 0)),      # a*norm_i
                pl.BlockSpec((1, n_pad), lambda t, j, kk: (0, 0)),      # norm_j
                pl.BlockSpec((tk, tj), lambda t, j, kk: (kk, j)),       # A_T bf16
            ],
            out_specs=pl.BlockSpec((c_pad, tj), lambda t, j, kk: (0, j)),
            scratch_shapes=[pltpu.VMEM((2 * c_pad, n_pad), jnp.float32)],
        ),
        compiler_params=pltpu.CompilerParams(
            dimension_semantics=("arbitrary", "arbitrary", "arbitrary"),
            vmem_limit_bytes=vmem_limit),
    )

    pad_n = n_pad - N
    pad_c = c_pad - C

    # All N^2-sized host-side prep (degrees, pad, transpose, bf16 cast) fused
    # into a single jit around the pallas_call.
    def _prep_and_run(adj_in, y_lab_in, mask_in):
        adj_f = adj_in.astype(jnp.float32)
        # A[dst, src]: in-deg = row sum, out-deg = col sum (matches the module).
        in_degs = jnp.maximum(jnp.sum(adj_f, axis=1), 1.0)
        out_degs = jnp.maximum(jnp.sum(adj_f, axis=0), 1.0)
        if norm_type == "sym":
            norm_i, norm_j = in_degs ** -0.5, out_degs ** -0.5
        else:
            norm_i, norm_j = 1.0 / in_degs, jnp.ones_like(out_degs)

        at_bf16 = jnp.pad(adj_f, ((0, pad_n), (0, pad_n))).T.astype(jnp.bfloat16)
        lab_t = jnp.pad(y_lab_in.T, ((0, pad_c), (0, pad_n)))
        mask_row = jnp.pad(mask_in, (0, pad_n)).reshape(1, n_pad)
        anormi_row = jnp.pad(float(alpha) * norm_i, (0, pad_n)).reshape(1, n_pad)
        normj_row = jnp.pad(norm_j, (0, pad_n),
                            constant_values=1.0).reshape(1, n_pad)
        out_t = lp_call(lab_t, mask_row, anormi_row, normj_row, at_bf16)
        return out_t[:C, :N].T              # back to node-major (N, C)

    return jax.jit(_prep_and_run)(adj, y_lab, mask_f)


# --------------------------------------------------------------------------- #
# pure-JAX reference (mirrors the PyTorch forward) + tests
# --------------------------------------------------------------------------- #
def _reference(adj, labels_onehot, mask, *, k, alpha, norm_type, clamp,
               normalize, reset):
    N = adj.shape[0]
    mask_f = (jnp.ones((N, 1), jnp.float32) if mask is None
              else mask.reshape(N, 1).astype(jnp.float32))
    y = labels_onehot * mask_f
    init = (1.0 - alpha) * y
    in_degs = jnp.maximum(jnp.sum(adj, axis=1, keepdims=True), 1.0)
    out_degs = jnp.maximum(jnp.sum(adj, axis=0, keepdims=True), 1.0).reshape(N, 1)
    if norm_type == "sym":
        norm_i, norm_j = in_degs ** -0.5, out_degs ** -0.5
    else:
        norm_i, norm_j = 1.0 / in_degs, jnp.ones_like(out_degs)
    for _ in range(k):
        h = y * norm_j if norm_type == "sym" else y
        agg = jnp.dot(adj, h, precision=lax.Precision.HIGHEST)
        y = init + alpha * agg * norm_i
        if clamp:
            y = jnp.clip(y, 0.0, 1.0)
        if normalize:
            y = y / jnp.maximum(jnp.sum(jnp.abs(y), axis=-1, keepdims=True), 1e-12)
        if reset:
            y = mask_f * labels_onehot + (1.0 - mask_f) * y
    return y


if __name__ == "__main__":
    key = jax.random.PRNGKey(0)
    ks = jax.random.split(key, 9)

    # --- Test 1: resident config (A_T fetched once), 'sym', strip-cast loop --
    N1, C1, K1, A1 = 256, 8, 3, 0.5
    adj1 = (jax.random.uniform(ks[0], (N1, N1)) < 0.05).astype(jnp.float32)
    labels1 = jax.random.randint(ks[1], (N1,), 0, C1, dtype=jnp.int32)
    mask1 = jax.random.uniform(ks[2], (N1,)) < 0.5

    out1 = label_propagation(adj1, labels1, mask1, k=K1, alpha=A1, norm_type="sym",
                             clamp=True, normalize=False, reset=False,
                             num_classes=C1, cast_strip=128)
    out1 = jax.block_until_ready(out1)
    lab1 = jax.nn.one_hot(labels1, C1, dtype=jnp.float32)
    ref1 = _reference(adj1, lab1, mask1, k=K1, alpha=A1, norm_type="sym",
                      clamp=True, normalize=False, reset=False)
    assert out1.shape == (N1, C1) and out1.dtype == jnp.float32
    assert jnp.allclose(out1, ref1, atol=5e-5, rtol=5e-5), \
        float(jnp.max(jnp.abs(out1 - ref1)))

    # --- Test 2: streamed config, 'row' + normalize + reset ------------------
    N2, C2, K2, A2 = 256, 8, 2, 0.7
    adj2 = (jax.random.uniform(ks[3], (N2, N2)) < 0.05).astype(jnp.float32)
    labels2 = jax.random.randint(ks[4], (N2,), 0, C2, dtype=jnp.int32)
    mask2 = jax.random.uniform(ks[5], (N2,)) < 0.3

    out2 = label_propagation(adj2, labels2, mask2, k=K2, alpha=A2, norm_type="row",
                             clamp=True, normalize=True, reset=True,
                             num_classes=C2, force_streamed=True,
                             tile_red=128, tile_cols=128)
    out2 = jax.block_until_ready(out2)
    lab2 = jax.nn.one_hot(labels2, C2, dtype=jnp.float32)
    ref2 = _reference(adj2, lab2, mask2, k=K2, alpha=A2, norm_type="row",
                      clamp=True, normalize=True, reset=True)
    assert out2.shape == (N2, C2) and out2.dtype == jnp.float32
    assert jnp.allclose(out2, ref2, atol=1e-4, rtol=1e-4), \
        float(jnp.max(jnp.abs(out2 - ref2)))

    # --- Test 3: streamed config, multi column/reduction tiles, 'sym' --------
    N3, C3, K3, A3 = 384, 8, 3, 0.6
    adj3 = (jax.random.uniform(ks[6], (N3, N3)) < 0.04).astype(jnp.float32)
    labels3 = jax.random.randint(ks[7], (N3,), 0, C3, dtype=jnp.int32)
    mask3 = jax.random.uniform(ks[8], (N3,)) < 0.4

    out3 = label_propagation(adj3, labels3, mask3, k=K3, alpha=A3, norm_type="sym",
                             clamp=True, normalize=False, reset=False,
                             num_classes=C3, force_streamed=True,
                             tile_red=128, tile_cols=256, cast_strip=128)
    out3 = jax.block_until_ready(out3)
    lab3 = jax.nn.one_hot(labels3, C3, dtype=jnp.float32)
    ref3 = _reference(adj3, lab3, mask3, k=K3, alpha=A3, norm_type="sym",
                      clamp=True, normalize=False, reset=False)
    assert out3.shape == (N3, C3) and out3.dtype == jnp.float32
    assert jnp.allclose(out3, ref3, atol=1e-4, rtol=1e-4), \
        float(jnp.max(jnp.abs(out3 - ref3)))

    print("KERNEL_OK")
</pallas_src>

<mosaic_0001>
module attributes {stable_mosaic.version = 11 : i64} {
  func.func @_lp_fused_kernel(%arg0: i32, %arg1: i32, %arg2: i32, %arg3: memref<8x256xf32, #tpu.memory_space<vmem>>, %arg4: memref<1x256xf32, #tpu.memory_space<vmem>>, %arg5: memref<1x256xf32, #tpu.memory_space<vmem>>, %arg6: memref<1x256xf32, #tpu.memory_space<vmem>>, %arg7: memref<256x256xbf16, #tpu.memory_space<vmem>>, %arg8: memref<8x256xf32, #tpu.memory_space<vmem>>, %arg9: memref<16x256xf32, #tpu.memory_space<vmem>>) attributes {dimension_semantics = [#tpu.dimension_semantics<arbitrary>, #tpu.dimension_semantics<arbitrary>, #tpu.dimension_semantics<arbitrary>], iteration_bounds = array<i64: 3, 1, 1>, scalar_prefetch = 0 : i64, scratch_operands = 1 : i64, tpu.core_type = #tpu.core_type<tc>, window_params = [{pipeline_mode = #tpu.pipeline_mode<synchronous>, transform_indices = @transform_0, window_bounds = array<i64: 8, 256>}, {pipeline_mode = #tpu.pipeline_mode<synchronous>, transform_indices = @transform_1, window_bounds = array<i64: 1, 256>}, {pipeline_mode = #tpu.pipeline_mode<synchronous>, transform_indices = @transform_2, window_bounds = array<i64: 1, 256>}, {pipeline_mode = #tpu.pipeline_mode<synchronous>, transform_indices = @transform_3, window_bounds = array<i64: 1, 256>}, {transform_indices = @transform_4, window_bounds = array<i64: 256, 256>}, {transform_indices = @transform_5, window_bounds = array<i64: 8, 256>}]} {
    %c0_i32 = arith.constant 0 : i32
    %0 = arith.cmpi eq, %arg0, %c0_i32 : i32
    %c0_i32_0 = arith.constant 0 : i32
    %1 = arith.cmpi eq, %arg1, %c0_i32_0 : i32
    %2 = arith.andi %0, %1 : i1
    %c0_i32_1 = arith.constant 0 : i32
    %3 = arith.cmpi eq, %arg2, %c0_i32_1 : i32
    %4 = arith.andi %2, %3 : i1
    %5 = arith.extui %4 : i1 to i32
    %c0_i32_2 = arith.constant 0 : i32
    %6 = arith.cmpi ne, %5, %c0_i32_2 : i32
    scf.if %6 {
      %c0_15 = arith.constant 0 : index
      %c0_16 = arith.constant 0 : index
      %34 = vector.load %arg3[%c0_15, %c0_16] : memref<8x256xf32, #tpu.memory_space<vmem>>, vector<8x256xf32>
      %c0_17 = arith.constant 0 : index
      %c0_18 = arith.constant 0 : index
      %35 = vector.load %arg4[%c0_17, %c0_18] : memref<1x256xf32, #tpu.memory_space<vmem>>, vector<1x256xf32>
      %36 = vector.broadcast %35 : vector<1x256xf32> to vector<8x256xf32>
      %37 = arith.mulf %34, %36 : vector<8x256xf32>
      %c0_19 = arith.constant 0 : index
      %c0_20 = arith.constant 0 : index
      %38 = vector.load %arg9[%c0_19, %c0_20] : memref<16x256xf32, #tpu.memory_space<vmem>>, vector<8x256xf32>
      tpu.vector_store %arg9[%c0_19, %c0_20], %37 {strides = array<i32>} : memref<16x256xf32, #tpu.memory_space<vmem>>, vector<8x256xf32>,
    } else {
    }
    %c0_i32_3 = arith.constant 0 : i32
    %7 = arith.cmpi eq, %arg2, %c0_i32_3 : i32
    %8 = arith.extui %7 : i1 to i32
    %c0_i32_4 = arith.constant 0 : i32
    %9 = arith.cmpi ne, %8, %c0_i32_4 : i32
    scf.if %9 {
      %cst = arith.constant 0.000000e+00 : f32
      %34 = vector.broadcast %cst : f32 to vector<8x256xf32>
      %c0_15 = arith.constant 0 : index
      %c0_16 = arith.constant 0 : index
      %35 = vector.load %arg8[%c0_15, %c0_16] : memref<8x256xf32, #tpu.memory_space<vmem>>, vector<8x256xf32>
      tpu.vector_store %arg8[%c0_15, %c0_16], %34 {strides = array<i32>} : memref<8x256xf32, #tpu.memory_space<vmem>>, vector<8x256xf32>,
    } else {
    }
    %c2_i32 = arith.constant 2 : i32
    %c0_i32_5 = arith.constant 0 : i32
    %10 = arith.cmpi eq, %c2_i32, %c0_i32_5 : i32
    %c1_i32 = arith.constant 1 : i32
    %11 = arith.select %10, %c1_i32, %c2_i32 : i32
    %12 = arith.remsi %arg0, %11 : i32
    %c0_i32_6 = arith.constant 0 : i32
    %13 = arith.cmpi ne, %12, %c0_i32_6 : i32
    %c0_i32_7 = arith.constant 0 : i32
    %14 = arith.cmpi slt, %12, %c0_i32_7 : i32
    %c0_i32_8 = arith.constant 0 : i32
    %15 = arith.cmpi slt, %11, %c0_i32_8 : i32
    %16 = arith.xori %14, %15 : i1
    %17 = arith.andi %16, %13 : i1
    %18 = arith.addi %12, %11 : i32
    %19 = arith.select %17, %18, %12 : i32
    %c256_i32 = arith.constant 256 : i32
    %20 = arith.muli %arg2, %c256_i32 : i32
    %21 = tpu.assume_multiple %20, 128 : i32
    %c8_i32 = arith.constant 8 : i32
    %22 = arith.muli %19, %c8_i32 : i32
    %23 = arith.index_cast %22 : i32 to index
    %24 = arith.index_cast %21 : i32 to index
    %25 = vector.load %arg9[%23, %24] : memref<16x256xf32, #tpu.memory_space<vmem>>, vector<8x256xf32>
    %c0 = arith.constant 0 : index
    %26 = arith.index_cast %21 : i32 to index
    %27 = vector.load %arg6[%c0, %26] : memref<1x256xf32, #tpu.memory_space<vmem>>, vector<1x256xf32>
    %28 = vector.broadcast %27 : vector<1x256xf32> to vector<8x256xf32>
    %29 = arith.mulf %25, %28 : vector<8x256xf32>
    %c0_i32_9 = arith.constant 0 : i32
    %c2_i32_10 = arith.constant 2 : i32
    %30 = arith.addi %c0_i32_9, %c2_i32_10 : i32
    %c1_i32_11 = arith.constant 1 : i32
    scf.for %arg10 = %c0_i32_9 to %30 step %c1_i32_11  : i32 {
      %c128_i32 = arith.constant 128 : i32
      %34 = arith.muli %arg10, %c128_i32 : i32
      %35 = tpu.assume_multiple %34, 128 : i32
      %c0_15 = arith.constant 0 : index
      %36 = arith.index_cast %35 : i32 to index
      %37 = vector.load %arg7[%c0_15, %36] : memref<256x256xbf16, #tpu.memory_space<vmem>>, vector<256x128xbf16>
      %38 = arith.extf %37 : vector<256x128xbf16> to vector<256x128xf32>
      %c0_16 = arith.constant 0 : index
      %39 = arith.index_cast %35 : i32 to index
      %40 = vector.load %arg8[%c0_16, %39] : memref<8x256xf32, #tpu.memory_space<vmem>>, vector<8x128xf32>
      %cst = arith.constant dense<0.000000e+00> : vector<8x128xf32>
      %41 = tpu.matmul %29, %38, %cst {dimension_numbers = #tpu.dot_dimension_numbers<[1], [0], [0], [1], [0, 0, 1, 1], [], []>} : vector<8x256xf32>, vector<256x128xf32>, vector<8x128xf32> -> vector<8x128xf32>
      %42 = arith.addf %40, %41 : vector<8x128xf32>
      %c0_17 = arith.constant 0 : index
      %43 = arith.index_cast %35 : i32 to index
      %44 = vector.load %arg8[%c0_17, %43] : memref<8x256xf32, #tpu.memory_space<vmem>>, vector<8x128xf32>
      tpu.vector_store %arg8[%c0_17, %43], %42 {strides = array<i32>} : memref<8x256xf32, #tpu.memory_space<vmem>>, vector<8x128xf32>,
    }
    %c2_i32_12 = arith.constant 2 : i32
    %c0_i32_13 = arith.constant 0 : i32
    %31 = arith.cmpi eq, %arg2, %c0_i32_13 : i32
    %32 = arith.extui %31 : i1 to i32
    %c0_i32_14 = arith.constant 0 : i32
    %33 = arith.cmpi ne, %32, %c0_i32_14 : i32
    scf.if %33 {
      %c256_i32_15 = arith.constant 256 : i32
      %34 = arith.muli %arg1, %c256_i32_15 : i32
      %35 = tpu.assume_multiple %34, 128 : i32
      %c0_16 = arith.constant 0 : index
      %36 = arith.index_cast %35 : i32 to index
      %37 = vector.load %arg3[%c0_16, %36] : memref<8x256xf32, #tpu.memory_space<vmem>>, vector<8x256xf32>
      %c0_17 = arith.constant 0 : index
      %38 = arith.index_cast %35 : i32 to index
      %39 = vector.load %arg4[%c0_17, %38] : memref<1x256xf32, #tpu.memory_space<vmem>>, vector<1x256xf32>
      %40 = vector.broadcast %39 : vector<1x256xf32> to vector<8x256xf32>
      %41 = arith.mulf %37, %40 : vector<8x256xf32>
      %cst = arith.constant 5.000000e-01 : f32
      %42 = vector.broadcast %cst : f32 to vector<8x256xf32>
      %43 = arith.mulf %42, %41 : vector<8x256xf32>
      %c0_18 = arith.constant 0 : index
      %c0_19 = arith.constant 0 : index
      %44 = vector.load %arg8[%c0_18, %c0_19] : memref<8x256xf32, #tpu.memory_space<vmem>>, vector<8x256xf32>
      %c0_20 = arith.constant 0 : index
      %45 = arith.index_cast %35 : i32 to index
      %46 = vector.load %arg5[%c0_20, %45] : memref<1x256xf32, #tpu.memory_space<vmem>>, vector<1x256xf32>
      %47 = vector.broadcast %46 : vector<1x256xf32> to vector<8x256xf32>
      %48 = arith.mulf %44, %47 : vector<8x256xf32>
      %49 = arith.addf %43, %48 : vector<8x256xf32>
      %cst_21 = arith.constant 0.000000e+00 : f32
      %cst_22 = arith.constant 1.000000e+00 : f32
      %50 = vector.broadcast %cst_21 : f32 to vector<8x256xf32>
      %51 = arith.maximumf %50, %49 : vector<8x256xf32>
      %52 = vector.broadcast %cst_22 : f32 to vector<8x256xf32>
      %53 = arith.minimumf %52, %51 : vector<8x256xf32>
      %c0_23 = arith.constant 0 : index
      %c0_24 = arith.constant 0 : index
      %54 = vector.load %arg8[%c0_23, %c0_24] : memref<8x256xf32, #tpu.memory_space<vmem>>, vector<8x256xf32>
      tpu.vector_store %arg8[%c0_23, %c0_24], %53 {strides = array<i32>} : memref<8x256xf32, #tpu.memory_space<vmem>>, vector<8x256xf32>,
      %c1_i32_25 = arith.constant 1 : i32
      %55 = arith.subi %c1_i32_25, %19 : i32
      %c8_i32_26 = arith.constant 8 : i32
      %56 = arith.muli %55, %c8_i32_26 : i32
      %57 = arith.index_cast %56 : i32 to index
      %58 = arith.index_cast %35 : i32 to index
      %59 = vector.load %arg9[%57, %58] : memref<16x256xf32, #tpu.memory_space<vmem>>, vector<8x256xf32>
      tpu.vector_store %arg9[%57, %58], %53 {strides = array<i32>} : memref<16x256xf32, #tpu.memory_space<vmem>>, vector<8x256xf32>,
    } else {
    }
    return
  }
  func.func @transform_0(%arg0: i32, %arg1: i32, %arg2: i32) -> (i32, i32) {
    %c0_i32 = arith.constant 0 : i32
    %c0_i32_0 = arith.constant 0 : i32
    %c0_i32_1 = arith.constant 0 : i32
    return %c0_i32, %c0_i32_0 : i32, i32
  }
  func.func @transform_1(%arg0: i32, %arg1: i32, %arg2: i32) -> (i32, i32) {
    %c0_i32 = arith.constant 0 : i32
    %c0_i32_0 = arith.constant 0 : i32
    %c0_i32_1 = arith.constant 0 : i32
    return %c0_i32, %c0_i32_0 : i32, i32
  }
  func.func @transform_2(%arg0: i32, %arg1: i32, %arg2: i32) -> (i32, i32) {
    %c0_i32 = arith.constant 0 : i32
    %c0_i32_0 = arith.constant 0 : i32
    %c0_i32_1 = arith.constant 0 : i32
    return %c0_i32, %c0_i32_0 : i32, i32
  }
  func.func @transform_3(%arg0: i32, %arg1: i32, %arg2: i32) -> (i32, i32) {
    %c0_i32 = arith.constant 0 : i32
    %c0_i32_0 = arith.constant 0 : i32
    %c0_i32_1 = arith.constant 0 : i32
    return %c0_i32, %c0_i32_0 : i32, i32
  }
  func.func @transform_4(%arg0: i32, %arg1: i32, %arg2: i32) -> (i32, i32) {
    %c0_i32 = arith.constant 0 : i32
    return %arg2, %arg1 : i32, i32
  }
  func.func @transform_5(%arg0: i32, %arg1: i32, %arg2: i32) -> (i32, i32) {
    %c0_i32 = arith.constant 0 : i32
    %c0_i32_0 = arith.constant 0 : i32
    return %c0_i32, %arg1 : i32, i32
  }
}

</mosaic_0001>

<bundles_post_ra>
// kernel: _prep_and_run.1
= control target key start
LH: loop header
LB: loop body
LE: loop exit
PB: predicated region body
PF: predicated region fallthrough
CT: control target
= control target key end

     0   :  { %10 = vsyncpa [#allocation4], 0  ;;  %s827_s18 = smov 0   ;;  %s829_s19 = smov 0   ;;  %s956_s0 = inlined_call_operand.vmem [shape: f32[8,256], index: 0, kind: input, shape index: {}]   ;;  %s957_s1 = inlined_call_operand.vmem [shape: f32[1,256], index: 1, kind: input, shape index: {}]   ;;  %s958_s2 = inlined_call_operand.vmem [shape: f32[1,256], index: 2, kind: input, shape index: {}]   ;;  %s959_s3 = inlined_call_operand.vmem [shape: f32[1,256], index: 3, kind: input, shape index: {}]   ;;  %s960_s4 = inlined_call_operand.vmem [shape: bf16[256,256], index: 4, kind: input, shape index: {}]   ;;  %s961_s5 = inlined_call_operand.hbm [shape: f32[8,256], index: 5, kind: output, shape index: {}]  }
   0x1   :  { %s831_s20 = smov 0  }
   0x2 LB: > { %s634_s21 = sadd.s32 4294967295, %s789_s20   ;;  %s35_s22 = sadd.s32 1, %s785_s19  ;;  %s789_s20 = sphi %s831_s20, %s16_s20   ;;  %s785_s19 = sphi %s829_s19, %s964_s19   ;;  %s781_s18 = sphi %s827_s18, %s963_s18  }
   0x3   : > { %p37_p0 = scmp.ge.s32.totalorder %s35_s22, 3  ;;  %p637_p1 = scmp.ge.s32.totalorder %s789_s20, 1 }
   0x4   : > { %p216_p2 = scmp.lt.s32.totalorder %s789_s20, 4 }
   0x5   : > { %s966_s22 = smov (%p37_p0, %s35_s22), 0 }
   0x6   : > { %p217_p3 = pnand %p637_p1, %p216_p2 }
   0x7   : > { %p257_p4 = scmp.eq.s32.totalorder (!%p217_p3), %s781_s18, 0 }
   0x8   : > { %220 = sbr.rel (%p217_p3) target bundleno = 298 (0x12a), region = 40 }
   0xd   : > { %265 = sbr.rel (!%p257_p4) target bundleno = 24 (0x18), region = 44  ;;  %v270_v0 = vlaneseq (%p257_p4)  ;;  %v268_v2 = vld [vmem:[%s957_s1] sm:$0x3] (%p257_p4)  ;;  %v267_v6 = vld [vmem:[%s956_s0 + $0x8] sm:$0xff] (%p257_p4) }
   0xe   : > { %v266_v5 = vld [vmem:[%s956_s0] sm:$0xff] (%p257_p4) }
   0xf   : > { %v271_v1 = vshrl.u32 (%p257_p4), %v270_v0, 7 }
  0x11   : > { %v272_v3 = vsub.s32 (%p257_p4), 0, %v271_v1  ;;  %v276_v4 = vsub.s32 (%p257_p4), 1, %v271_v1 }
  0x13   : > { %v273_v7 = vrot.slane %v268_v2, %v272_v3  ;;  %v277_v8 = vrot.slane %v268_v2, %v276_v4 }
  0x15   : > { %v280_v9 = vmul.f32 %v273_v7, %v266_v5  ;;  %v281_v10 = vmul.f32 %v277_v8, %v267_v6 }
  0x17   : > { %282 = vst [vmem:[#allocation2] sm:$0xff] %v280_v9  ;;  %283 = vst [vmem:[#allocation2 + $0x8] sm:$0xff] %v281_v10 }
  0x18 PF: > { %p289_p5 = scmp.lt.s32.totalorder %s781_s18, 0  ;;  %s290_s29 = ssub.s32 0, %s781_s18  ;;  %v316_v11 = vlaneseq  ;;  %v795_v12 = vmov 0.0   ;;  %v314_v16 = vld [vmem:[%s959_s3] sm:$0x3] }
  0x19   : > { %287 = vst [vmem:[#allocation3] sm:$0xff] %v795_v12  ;;  %288 = vst [vmem:[#allocation3 + $0x8] sm:$0xff] %v795_v12  ;;  %s640_s30 = smin.u32 %s781_s18, %s290_s29  ;;  %s877_s15 = smov 0  }
  0x1a   : > { %s292_s6 = sand.u32 1, %s640_s30   ;;  %v317_v13 = vshrl.u32 %v316_v11, 7 }
  0x1b   : > { %s293_s7 = ssub.s32 0, %s292_s6 }
  0x1c   : > { %s968_s7 = smov (!%p289_p5, %s293_s7), %s292_s6  ;;  %v861_v14 = vsub.s32 0, %v317_v13  ;;  %v863_v15 = vsub.s32 1, %v317_v13 }
  0x1d   : > { %p642_p6 = scmp.lt.s32.totalorder %s968_s7, 0  ;;  %s299_s8 = sadd.s32 2, %s968_s7 }
  0x1e   : > { %v319_v17 = vrot.slane %v314_v16, %v861_v14  ;;  %v323_v18 = vrot.slane %v314_v16, %v863_v15 }
  0x1f   : > { %s970_s8 = smov (!%p642_p6, %s299_s8), %s968_s7 }
  0x20   : > { %s643_s11 = sshll.u32 %s970_s8, 3 }
  0x21   : > { %s305_s12 = sshra.s32 %s643_s11, 3 }
  0x22   : > { %s658_s13 = sshll.u32 %s305_s12, 4 }
  0x23   : > { %s310_s14 = scalar_lea.vmem [#allocation2], %s658_s13 }
  0x24   : > { %v311_v19 = vld [vmem:[%s310_s14] sm:$0xff]  ;;  %v312_v20 = vld [vmem:[%s310_s14 + $0x8] sm:$0xff] }
  0x25   : > { %v873_v21 = vmul.f32 %v319_v17, %v311_v19  ;;  %v875_v22 = vmul.f32 %v323_v18, %v312_v20 }
  0x26 LB: >> { %s646_s16 = sshll.u32 %s793_s15, 7  ;;  %s333_s15 = sadd.s32 1, %s793_s15   ;;  %s793_s15 = sphi %s877_s15, %s333_s15  }
  0x27   : >> { %470 = vmatprep.mubr.f32.mxu0 %v875_v22  ;;  %s884_s17 = sshra.s32 %s646_s16, 7  ;;  %p330_p7 = scmp.ge.s32.totalorder %s333_s15, 2  }
  0x28   : >> { %s647_s18 = sshll.u32 %s884_s17, 2  ;;  %s648_s26 = sshll.u32 %s884_s17, 3  ;;  %v486_v12 = vld [vmem:[%s956_s0] sm:$0xff] (%p330_p7)  ;;  %v487_v19 = vld [vmem:[%s956_s0 + $0x8] sm:$0xff] (%p330_p7) }
  0x29   : >> { %s890_s25 = scalar_lea.vmem %s960_s4, %s647_s18  ;;  %s404_s27 = scalar_lea.vmem [#allocation3], %s648_s26  ;;  %v489_v13 = vld [vmem:[%s957_s1] sm:$0x3] (%p330_p7) }
  0x2a   : >> { %v370_v23 = vld [vmem:[%s890_s25 + $0xf0] ss:$8 sps:$4 sm:$0xff]   ;;  %v368_v25 = vld [vmem:[%s890_s25 + $0xe0] ss:$8 sps:$4 sm:$0xff]   ;;  %s530_s7 = ssub.s32 (%p330_p7), 1, %s970_s8  ;;  %v494_v17 = vrot.slane (%p330_p7), %v489_v13, %v861_v14  ;;  %v498_v20 = vrot.slane (%p330_p7), %v489_v13, %v863_v15  ;;  %s796_s15 = smov (%p330_p7), [#allocation3]  }
  0x2b   : >> { %v354_v24 = vld [vmem:[%s890_s25 + $0x70] ss:$8 sps:$4 sm:$0xff]   ;;  %v402_v26 = vunpack.c.h.bf16 %v370_v23  ;;  %v401_v28 = vunpack.c.l.bf16 %v370_v23  ;;  %v352_v29 = vld [vmem:[%s890_s25 + $0x60] ss:$8 sps:$4 sm:$0xff]   ;;  %v400_v31 = vunpack.c.h.bf16 %v368_v25  ;;  %v399_v34 = vunpack.c.l.bf16 %v368_v25  ;;  %s649_s13 = sshll.u32 (%p330_p7), %s530_s7, 3  ;;  %s550_s16 = sshll.u32 (%p330_p7), %s796_s15, 4  ;;  %s551_s16 = int_to_ptr.vmem [resolvable:$true] %s550_s16 }
  0x2c   : >> { %v386_v27 = vunpack.c.h.bf16 %v354_v24  ;;  %v385_v30 = vunpack.c.l.bf16 %v354_v24  ;;  %v384_v32 = vunpack.c.h.bf16 %v352_v29  ;;  %v366_v33 = vld [vmem:[%s890_s25 + $0xd0] ss:$8 sps:$4 sm:$0xff]   ;;  %v383_v36 = vunpack.c.l.bf16 %v352_v29  ;;  %v364_v39 = vld [vmem:[%s890_s25 + $0xc0] ss:$8 sps:$4 sm:$0xff]   ;;  %s532_s8 = sshra.s32 (%p330_p7), %s649_s13, 3  ;;  %p932_p8 = scmp.eq.s32.totalorder (%p330_p7), %s634_s21, 2 }
  0x2d   : >> { %660 = vmatprep.subr.mxu0 %v402_v26  ;;  %v350_v35 = vld [vmem:[%s890_s25 + $0x50] ss:$8 sps:$4 sm:$0xff]   ;;  %v398_v37 = vunpack.c.h.bf16 %v366_v33  ;;  %v397_v40 = vunpack.c.l.bf16 %v366_v33  ;;  %v348_v41 = vld [vmem:[%s890_s25 + $0x40] ss:$8 sps:$4 sm:$0xff]   ;;  %v396_v43 = vunpack.c.h.bf16 %v364_v39  ;;  %v395_v46 = vunpack.c.l.bf16 %v364_v39  ;;  %s659_s14 = sshll.u32 (%p330_p7), %s532_s8, 4  ;;  %s735_s23 = scalar_lea.vmem (%p330_p7), %s551_s16, 256 }
  0x2e   : >> { %661 = vmatpush3.msra.mxu0 %v386_v27  ;;  %v382_v38 = vunpack.c.h.bf16 %v350_v35  ;;  %v381_v42 = vunpack.c.l.bf16 %v350_v35  ;;  %v380_v44 = vunpack.c.h.bf16 %v348_v41  ;;  %v362_v45 = vld [vmem:[%s890_s25 + $0xb0] ss:$8 sps:$4 sm:$0xff]   ;;  %v379_v48 = vunpack.c.l.bf16 %v348_v41  ;;  %v360_v51 = vld [vmem:[%s890_s25 + $0xa0] ss:$8 sps:$4 sm:$0xff]   ;;  %s537_s18 = scalar_lea.vmem (%p330_p7), [#allocation2], %s659_s14  ;;  %p736_p9 = scmp.ne.s32.totalorder (%p330_p7), %s551_s16, %s735_s23 }
  0x2f   : >> { %662 = vmatprep.subr.mxu0 %v401_v28  ;;  %v346_v47 = vld [vmem:[%s890_s25 + $0x30] ss:$8 sps:$4 sm:$0xff]   ;;  %v394_v49 = vunpack.c.h.bf16 %v362_v45  ;;  %v393_v52 = vunpack.c.l.bf16 %v362_v45  ;;  %v344_v53 = vld [vmem:[%s890_s25 + $0x20] ss:$8 sps:$4 sm:$0xff]   ;;  %v392_v55 = vunpack.c.h.bf16 %v360_v51  ;;  %v391_v58 = vunpack.c.l.bf16 %v360_v51  ;;  %p742_p12 = scmp.lt.s32.totalorder (%p330_p7), %s551_s16, %s551_s16  ;;  %p743_p13 = scmp.lt.s32.totalorder (%p330_p7), %s735_s23, %s735_s23 }
  0x30   : >> { %663 = vmatpush3.msra.mxu0 %v385_v30  ;;  %v378_v50 = vunpack.c.h.bf16 %v346_v47  ;;  %v377_v54 = vunpack.c.l.bf16 %v346_v47  ;;  %v376_v56 = vunpack.c.h.bf16 %v344_v53  ;;  %v358_v57 = vld [vmem:[%s890_s25 + $0x90] ss:$8 sps:$4 sm:$0xff]   ;;  %v375_v60 = vunpack.c.l.bf16 %v344_v53  ;;  %v356_v63 = vld [vmem:[%s890_s25 + $0x80] ss:$8 sps:$4 sm:$0xff]   ;;  %p737_p10 = pnand (%p330_p7), %p736_p9, %p932_p8 }
  0x31   : >> { %664 = vmatprep.subr.mxu0 %v400_v31  ;;  %v342_v59 = vld [vmem:[%s890_s25 + $0x10] ss:$8 sps:$4 sm:$0xff]   ;;  %v390_v61 = vunpack.c.h.bf16 %v358_v57  ;;  %v389_v0 = vunpack.c.l.bf16 %v358_v57  ;;  %v340_v1 = vld [vmem:[%s890_s25] ss:$8 sps:$4 sm:$0xff]   ;;  %v388_v3 = vunpack.c.h.bf16 %v356_v63  ;;  %v387_v5 = vunpack.c.l.bf16 %v356_v63  ;;  %p744_p0 = por (%p330_p7), %p743_p13, %p742_p12 }
  0x32   : >> { %665 = vmatpush3.msra.mxu0 %v384_v32  ;;  %v374_v62 = vunpack.c.h.bf16 %v342_v59  ;;  %v373_v2 = vunpack.c.l.bf16 %v342_v59  ;;  %v372_v4 = vunpack.c.h.bf16 %v340_v1  ;;  %v371_v6 = vunpack.c.l.bf16 %v340_v1  ;;  %v405_v8 = vld [vmem:[%s404_s27] sm:$0xff]  ;;  %p738_p11 = pneg (%p330_p7), %p737_p10 }
  0x33   : >> { %666 = vmatprep.subr.mxu0 %v399_v34  ;;  %v508_v18 = vld [vmem:[%s958_s2] sm:$0x3] (%p330_p7)  ;;  %v501_v24 = vmul.f32 (%p330_p7), %v494_v17, %v486_v12  ;;  %v502_v25 = vmul.f32 (%p330_p7), %v498_v20, %v487_v19 }
  0x34   : >> { %667 = vmatpush3.msra.mxu0 %v383_v36  ;;  %v513_v22 = vrot.slane (%p330_p7), %v508_v18, %v861_v14  ;;  %v517_v23 = vrot.slane (%p330_p7), %v508_v18, %v863_v15  ;;  %p745_p1 = pnand (%p330_p7), %p744_p0, %p738_p11 }
  0x35   : >> { %668 = vmatprep.subr.mxu0 %v398_v37  ;;  %v503_v28 = vmul.f32 (%p330_p7), 0.5, %v501_v24  ;;  %v504_v29 = vmul.f32 (%p330_p7), 0.5, %v502_v25 }
  0x36   : >> { %669 = vmatpush3.msra.mxu0 %v382_v38 }
  0x37   : >> { %670 = vmatprep.subr.mxu0 %v397_v40 }
  0x38   : >> { %671 = vmatpush3.msra.mxu0 %v381_v42 }
  0x39   : >> { %672 = vmatprep.subr.mxu0 %v396_v43 }
  0x3a   : >> { %673 = vmatpush3.msra.mxu0 %v380_v44 }
  0x3b   : >> { %674 = vmatprep.subr.mxu0 %v395_v46 }
  0x3c   : >> { %675 = vmatpush3.msra.mxu0 %v379_v48 }
  0x3d   : >> { %676 = vmatprep.subr.mxu0 %v394_v49 }
  0x3e   : >> { %677 = vmatpush3.msra.mxu0 %v378_v50 }
  0x3f   : >> { %678 = vmatprep.subr.mxu0 %v393_v52 }
  0x40   : >> { %679 = vmatpush3.msra.mxu0 %v377_v54 }
  0x41   : >> { %680 = vmatprep.subr.mxu0 %v392_v55 }
  0x42   : >> { %681 = vmatpush3.msra.mxu0 %v376_v56 }
  0x43   : >> { %682 = vmatprep.subr.mxu0 %v391_v58 }
  0x44   : >> { %683 = vmatpush3.msra.mxu0 %v375_v60 }
  0x45   : >> { %684 = vmatprep.subr.mxu0 %v390_v61 }
  0x46   : >> { %685 = vmatpush3.msra.mxu0 %v374_v62 }
  0x47   : >> { %686 = vmatprep.subr.mxu0 %v389_v0 }
  0x48   : >> { %687 = vmatpush3.msra.mxu0 %v373_v2 }
  0x49   : >> { %688 = vmatprep.subr.mxu0 %v388_v3 }
  0x4a   : >> { %689 = vmatpush3.msra.mxu0 %v372_v4 }
  0x4b   : >> { %690 = vmatprep.subr.mxu0 %v387_v5 }
  0x4c   : >> { %691 = vmatpush3.msra.mxu0 %v371_v6 }
  0x4d   : >> { %471 = vmatmul.mubr.f32.vlgmr.msra.gmra.mxu0 %v873_v21 }
 0x10d   : >> { %v692_v7 = vpop.f32.mrf.mxu0 }
 0x10f   : >> { %v693_v9 = vpop.f32.mrf.mxu0 }
 0x110   : >> { %v694_v10 = vadd.f32 %v693_v9, %v692_v7  ;;  %332 = sbr.rel (!%p330_p7) target bundleno = 38 (0x26), region = 95 }
 0x112   : >> { %v476_v11 = vadd.f32 %v694_v10, %v405_v8 }
 0x114   : >> { %477 = vst [vmem:[%s404_s27] sm:$0xff] %v476_v11 }
 0x11b   : > { %v505_v16 = vld [vmem:[#allocation3] sm:$0xff]  ;;  %v506_v21 = vld [vmem:[#allocation3 + $0x8] sm:$0xff] }
 0x11c   : > { %v520_v26 = vmul.f32 %v513_v22, %v505_v16  ;;  %v521_v27 = vmul.f32 %v517_v23, %v506_v21 }
 0x11e   : > { %v522_v30 = vadd.f32 %v520_v26, %v503_v28  ;;  %v523_v31 = vadd.f32 %v521_v27, %v504_v29 }
 0x120   : > { %v524_v32 = vmax.f32 %v522_v30, 0.0  ;;  %v525_v33 = vmax.f32 %v523_v31, 0.0 }
 0x122   : > { %v526_v14 = vmin.f32 %v524_v32, 1.0  ;;  %v527_v15 = vmin.f32 %v525_v33, 1.0 }
 0x124   : > { %528 = vst [vmem:[#allocation3] sm:$0xff] %v526_v14  ;;  %529 = vst [vmem:[#allocation3 + $0x8] sm:$0xff] %v527_v15 }
 0x125   : > { %538 = vst [vmem:[%s537_s18] sm:$0xff] %v526_v14  ;;  %539 = vst [vmem:[%s537_s18 + $0x8] sm:$0xff] %v527_v15 }
 0x126   : > { %748 = shalt.err (!%p745_p1)
}
 0x127   : > { %696 = dma.vmem_to_hbm [thread:$0]  (%p932_p8), %s551_s16, 256, %s961_s5, [#allocation4]  }
 0x128   : > { %776 = dma.done.wait (%p932_p8), [#allocation4], 256  }
 0x129   : > { %778 = vsyncadd (%p932_p8), [#allocation4], 4294967040 }
 0x12a PF: > { %s16_s20 = sadd.s32 1, %s789_s20   ;;  %s963_s18 = smov %s785_s19 }
 0x12b   : > { %p13_p2 = scmp.ge.s32.totalorder %s16_s20, 5   ;;  %s964_s19 = smov %s966_s22 }
 0x12d   :  { %15 = sbr.rel (!%p13_p2) target bundleno = 2 (0x2), region = 106 }
 0x132   :  { %563 = vsyncpa [#allocation4], 1 }
 0x133   :  { %565 = vsyncpa [#allocation4 + $0x1], 1 }

</bundles_post_ra>
